<compile_context>
chip_gen: v6e
topology: v6e:2x2x1
jax: 0.10.0
libtpu: 0.0.40
codegen_flags: <defaults>
</compile_context>

<pallas_src>
import functools

import jax
import jax.numpy as jnp
from jax.experimental import pallas as pl
from jax.experimental.pallas import tpu as pltpu

_LANES = 128                       # f32 vreg lane width
_SUBLANES = 8                      # f32 vreg sublane count
_VREG_ROWS = _SUBLANES * _LANES    # 1024: padding granularity (one f32 vreg)


def _mlp_kernel(p_ref, x_ref, o_ref):
    """p_ref: SMEM f32[9] = [w00, w01, w10, w11, b1_0, b1_1, v0, v1, b2]
    x_ref: VMEM f32[2, TR, 128]  (feature, batch-rows, batch-lanes)
    o_ref: VMEM f32[TR, 128]
    """
    w00 = p_ref[0]
    w01 = p_ref[1]
    w10 = p_ref[2]
    w11 = p_ref[3]
    b10 = p_ref[4]
    b11 = p_ref[5]
    v0 = p_ref[6]
    v1 = p_ref[7]
    b2 = p_ref[8]

    x0 = x_ref[0]   # [TR, 128] dense (8, 128) f32 vregs
    x1 = x_ref[1]   # [TR, 128]

    # fc1 + ReLU, fully unrolled VPU multiply-adds (no MXU involvement).
    h0 = jnp.maximum(w00 * x0 + w01 * x1 + b10, 0.0)
    h1 = jnp.maximum(w10 * x0 + w11 * x1 + b11, 0.0)

    # fc2
    o_ref[...] = v0 * h0 + v1 * h1 + b2


def net_forward(x, w1, b1, w2, b2, *, block_rows=None, feature_major=False):
    """Forward pass of Net: fc2(relu(fc1(x))).

    Args:
      x: [N, 2] f32 (PyTorch layout), or [2, N] if feature_major=True.
      w1: [2, 2] (out, in); b1: [2]; w2: [1, 2] (out, in); b2: [1].
      block_rows: rows of 128 batch elements per grid step (multiple of 8).
      feature_major: x is already [2, N]; skips the wrapper-side transpose.

    Returns:
      [N, 1] f32, matching PyTorch's fc2(relu(fc1(x))).
    """
    # Pack the 9 parameter scalars into one SMEM array.
    params = jnp.concatenate(
        [w1.reshape(-1), b1.reshape(-1), w2.reshape(-1), b2.reshape(-1)]
    ).astype(jnp.float32)  # [9]

    if feature_major:
        n = x.shape[1]
        xt = x.astype(jnp.float32)          # [2, N], no transpose needed
    else:
        n = x.shape[0]
        # Under jit this transpose+cast fuses with the pad below into a single
        # XLA relayout pass feeding the kernel (no separate transpose copy).
        xt = x.astype(jnp.float32).T        # [2, N]

    # Pad the batch only to vreg granularity (1024 rows), NOT to a full block:
    # waste stays < 1024 rows regardless of tile size.  A ragged last grid
    # block is masked by Pallas and sliced off below.
    n_pad = pl.cdiv(n, _VREG_ROWS) * _VREG_ROWS
    if n_pad != n:
        xt = jnp.pad(xt, ((0, 0), (0, n_pad - n)))

    r = n_pad // _LANES                     # multiple of 8
    xr = xt.reshape(2, r, _LANES)

    if block_rows is None:
        # ~3 MiB of HBM traffic per step (2 MiB in + 1 MiB out) amortizes the
        # ~0.35 us fixed per-step overhead; cap the block so the parallel grid
        # keeps >= 4 steps to shard across v7x's two TensorCores.
        quarter = pl.cdiv(pl.cdiv(r, 4), _SUBLANES) * _SUBLANES
        block_rows = max(_SUBLANES, min(2048, quarter))

    grid = (pl.cdiv(r, block_rows),)

    # NOTE: streaming x / out in bfloat16 would halve HBM bytes on this
    # memory-bound kernel, but changes numerics vs. the f32 reference, so it
    # is intentionally not enabled.

    cost = pl.CostEstimate(
        flops=13 * n_pad,                   # 8 (fc1) + 1 (relu cmp) + 4 (fc2)
        transcendentals=0,
        bytes_accessed=(2 * n_pad + n_pad + 9) * 4,
    )

    out = pl.pallas_call(
        _mlp_kernel,
        out_shape=jax.ShapeDtypeStruct((r, _LANES), jnp.float32),
        grid=grid,
        in_specs=[
            # 9 parameter scalars, untiled, in SMEM (read into sregs).
            pl.BlockSpec(memory_space=pltpu.MemorySpace.SMEM),
            # x, feature-major, batch dense over (sublane, lane).
            pl.BlockSpec((2, block_rows, _LANES), lambda i: (0, i, 0)),
        ],
        out_specs=pl.BlockSpec((block_rows, _LANES), lambda i: (i, 0)),
        compiler_params=pltpu.CompilerParams(
            dimension_semantics=("parallel",),
            # Double-buffered footprint ~ 2 * (3 * block_rows * 128 * 4) B
            # (~6 MiB at block_rows=2048): safely inside the 32 MiB scoped
            # budget on v5e/v6e/v7x (v7x physical VMEM = 64 MiB).
            vmem_limit_bytes=32 * 1024 * 1024,
        ),
        cost_estimate=cost,
    )(params, xr)

    # Back to the PyTorch layout [N, 1].  [r, 128] -> [n_pad] is a pure
    # (bitcast) reshape; the [:n] slice drops the padded rows.
    return out.reshape(n_pad)[:n].reshape(n, 1)


def _init_params(key):
    """Deterministic init mimicking PyTorch's default Linear init
    (U[-1/sqrt(fan_in), 1/sqrt(fan_in)])."""
    k1, k2, k3, k4 = jax.random.split(key, 4)
    bound = 1.0 / jnp.sqrt(2.0)  # fan_in = 2 for both layers
    w1 = jax.random.uniform(k1, (2, 2), jnp.float32, -bound, bound)  # [out, in]
    b1 = jax.random.uniform(k2, (2,), jnp.float32, -bound, bound)
    w2 = jax.random.uniform(k3, (1, 2), jnp.float32, -bound, bound)  # [out, in]
    b2 = jax.random.uniform(k4, (1,), jnp.float32, -bound, bound)
    return w1, b1, w2, b2


if __name__ == "__main__":
    key = jax.random.PRNGKey(0)
    k_params, k_x1, k_x2 = jax.random.split(key, 3)

    w1, b1, w2, b2 = _init_params(k_params)

    def reference(x):
        return jnp.maximum(x @ w1.T + b1, 0.0) @ w2.T + b2

    fwd = jax.jit(net_forward)
    fwd_fm = jax.jit(functools.partial(net_forward, feature_major=True))

    # Case 1: batch divisible by 1024 -> no pad, multi-step parallel grid.
    x_a = jax.random.normal(k_x1, (4096, 2), jnp.float32)
    out_a = jax.block_until_ready(fwd(x_a, w1, b1, w2, b2))
    assert out_a.shape == (4096, 1)
    assert jnp.allclose(out_a, reference(x_a), atol=1e-5, rtol=1e-5)

    # Case 2: ragged batch -> vreg-granularity pad (5000 -> 5120), a partial
    # last grid block (masked by Pallas), and the final [:n] slice.
    x_b = jax.random.normal(k_x2, (5000, 2), jnp.float32)
    out_b = jax.block_until_ready(fwd(x_b, w1, b1, w2, b2))
    assert out_b.shape == (5000, 1)
    assert jnp.allclose(out_b, reference(x_b), atol=1e-5, rtol=1e-5)

    # Case 3: feature-major fast path (no wrapper-side transpose at all).
    out_c = jax.block_until_ready(fwd_fm(x_b.T, w1, b1, w2, b2))
    assert jnp.allclose(out_c, out_b, atol=1e-6, rtol=1e-6)

    print("KERNEL_OK")
</pallas_src>

<mosaic_0001>
module attributes {stable_mosaic.version = 11 : i64} {
  func.func @_mlp_kernel(%arg0: i32, %arg1: memref<9xf32, #tpu.memory_space<smem>>, %arg2: memref<2x8x128xf32, #tpu.memory_space<vmem>>, %arg3: memref<8x128xf32, #tpu.memory_space<vmem>>) attributes {dimension_semantics = [#tpu.dimension_semantics<parallel>], iteration_bounds = array<i64: 4>, scalar_prefetch = 0 : i64, scratch_operands = 0 : i64, tpu.core_type = #tpu.core_type<tc>, window_params = [{transform_indices = @transform_0, window_bounds = array<i64: 9>}, {transform_indices = @transform_1, window_bounds = array<i64: 2, 8, 128>}, {transform_indices = @transform_2, window_bounds = array<i64: 8, 128>}]} {
    %c0 = arith.constant 0 : index
    %0 = memref.load %arg1[%c0] : memref<9xf32, #tpu.memory_space<smem>>
    %c1 = arith.constant 1 : index
    %1 = memref.load %arg1[%c1] : memref<9xf32, #tpu.memory_space<smem>>
    %c2 = arith.constant 2 : index
    %2 = memref.load %arg1[%c2] : memref<9xf32, #tpu.memory_space<smem>>
    %c3 = arith.constant 3 : index
    %3 = memref.load %arg1[%c3] : memref<9xf32, #tpu.memory_space<smem>>
    %c4 = arith.constant 4 : index
    %4 = memref.load %arg1[%c4] : memref<9xf32, #tpu.memory_space<smem>>
    %c5 = arith.constant 5 : index
    %5 = memref.load %arg1[%c5] : memref<9xf32, #tpu.memory_space<smem>>
    %c6 = arith.constant 6 : index
    %6 = memref.load %arg1[%c6] : memref<9xf32, #tpu.memory_space<smem>>
    %c7 = arith.constant 7 : index
    %7 = memref.load %arg1[%c7] : memref<9xf32, #tpu.memory_space<smem>>
    %c8 = arith.constant 8 : index
    %8 = memref.load %arg1[%c8] : memref<9xf32, #tpu.memory_space<smem>>
    %c0_0 = arith.constant 0 : index
    %c0_1 = arith.constant 0 : index
    %c0_2 = arith.constant 0 : index
    %9 = vector.load %arg2[%c0_0, %c0_1, %c0_2] : memref<2x8x128xf32, #tpu.memory_space<vmem>>, vector<1x8x128xf32>
    %10 = vector.shape_cast %9 : vector<1x8x128xf32> to vector<8x128xf32>
    %c1_3 = arith.constant 1 : index
    %c0_4 = arith.constant 0 : index
    %c0_5 = arith.constant 0 : index
    %11 = vector.load %arg2[%c1_3, %c0_4, %c0_5] : memref<2x8x128xf32, #tpu.memory_space<vmem>>, vector<1x8x128xf32>
    %12 = vector.shape_cast %11 : vector<1x8x128xf32> to vector<8x128xf32>
    %13 = vector.broadcast %0 : f32 to vector<8x128xf32>
    %14 = arith.mulf %13, %10 : vector<8x128xf32>
    %15 = vector.broadcast %1 : f32 to vector<8x128xf32>
    %16 = arith.mulf %15, %12 : vector<8x128xf32>
    %17 = arith.addf %14, %16 : vector<8x128xf32>
    %18 = vector.broadcast %4 : f32 to vector<8x128xf32>
    %19 = arith.addf %17, %18 : vector<8x128xf32>
    %cst = arith.constant 0.000000e+00 : f32
    %20 = vector.broadcast %cst : f32 to vector<8x128xf32>
    %21 = arith.maximumf %19, %20 : vector<8x128xf32>
    %22 = vector.broadcast %2 : f32 to vector<8x128xf32>
    %23 = arith.mulf %22, %10 : vector<8x128xf32>
    %24 = vector.broadcast %3 : f32 to vector<8x128xf32>
    %25 = arith.mulf %24, %12 : vector<8x128xf32>
    %26 = arith.addf %23, %25 : vector<8x128xf32>
    %27 = vector.broadcast %5 : f32 to vector<8x128xf32>
    %28 = arith.addf %26, %27 : vector<8x128xf32>
    %cst_6 = arith.constant 0.000000e+00 : f32
    %29 = vector.broadcast %cst_6 : f32 to vector<8x128xf32>
    %30 = arith.maximumf %28, %29 : vector<8x128xf32>
    %31 = vector.broadcast %6 : f32 to vector<8x128xf32>
    %32 = arith.mulf %31, %21 : vector<8x128xf32>
    %33 = vector.broadcast %7 : f32 to vector<8x128xf32>
    %34 = arith.mulf %33, %30 : vector<8x128xf32>
    %35 = arith.addf %32, %34 : vector<8x128xf32>
    %36 = vector.broadcast %8 : f32 to vector<8x128xf32>
    %37 = arith.addf %35, %36 : vector<8x128xf32>
    %c0_7 = arith.constant 0 : index
    %c0_8 = arith.constant 0 : index
    %38 = vector.load %arg3[%c0_7, %c0_8] : memref<8x128xf32, #tpu.memory_space<vmem>>, vector<8x128xf32>
    tpu.vector_store %arg3[%c0_7, %c0_8], %37 {strides = array<i32>} : memref<8x128xf32, #tpu.memory_space<vmem>>, vector<8x128xf32>,
    return
  }
  func.func @transform_0(%arg0: i32) -> i32 {
    %c0_i32 = arith.constant 0 : i32
    %c0_i32_0 = arith.constant 0 : i32
    return %c0_i32 : i32
  }
  func.func @transform_1(%arg0: i32) -> (i32, i32, i32) {
    %c0_i32 = arith.constant 0 : i32
    %c0_i32_0 = arith.constant 0 : i32
    %c0_i32_1 = arith.constant 0 : i32
    return %c0_i32, %arg0, %c0_i32_0 : i32, i32, i32
  }
  func.func @transform_2(%arg0: i32) -> (i32, i32) {
    %c0_i32 = arith.constant 0 : i32
    %c0_i32_0 = arith.constant 0 : i32
    return %arg0, %c0_i32 : i32, i32
  }
}

</mosaic_0001>

<bundles_post_ra>
// kernel: net_forward.1
= control target key start
LH: loop header
LB: loop body
LE: loop exit
PB: predicated region body
PF: predicated region fallthrough
CT: control target
= control target key end

     0   :  { %7 = vsyncpa [#allocation4], 0  ;;  %s617_s0 = inlined_call_operand.vmem [shape: f32[9], index: 0, kind: input, shape index: {}]   ;;  %s618_s1 = inlined_call_operand.vmem [shape: f32[2,32,128], index: 1, kind: input, shape index: {}]   ;;  %s619_s2 = inlined_call_operand.hbm [shape: f32[32,128], index: 2, kind: output, shape index: {}]  }
   0x1   :  { %8 = vsyncpa [#allocation3], 0 }
   0x2   :  { %10 = vsyncpa [#allocation3 + $0x1], 0  ;;  %s493_s9 = smov 0   ;;  %s495_s10 = smov 0  }
   0x3   :  { %s497_s11 = smov 0   ;;  %s499_s12 = smov 0  }
   0x4 LB: > { %s514_s13 = sadd.s32 4294967295, %s474_s12   ;;  %s322_s14 = sadd.s32 4294967294, %s474_s12   ;;  %s474_s12 = sphi %s499_s12, %s630_s12   ;;  %s470_s11 = sphi %s497_s11, %s629_s11   ;;  %s466_s10 = sphi %s495_s10, %s628_s10   ;;  %s462_s9 = sphi %s493_s9, %s627_s9  }
   0x5   : > { %s518_s15 = sadd.s32 1, %s474_s12   ;;  %s44_s16 = sadd.s32 1, %s470_s11 }
   0x6   : > { %s41_s17 = ssub.s32 %s474_s12, %s518_s15  ;;  %p51_p0 = scmp.ne.s32.totalorder %s470_s11, %s466_s10 }
   0x7   : > { %p42_p1 = scmp.eq.s32.totalorder %s41_s17, 0  ;;  %p52_p2 = scmp.eq.s32.totalorder %s474_s12, 0 }
   0x8   : > { %p81_p3 = scmp.eq.s32.totalorder %s514_s13, 3  ;;  %p86_p4 = scmp.ne.s32.totalorder %s466_s10, %s462_s9 }
   0x9   : > { %s530_s18 = scalar_select %p42_p1, %s470_s11, %s44_s16  }
   0xa   : > { %p532_p5 = por %p52_p2, %p51_p0  ;;  %p536_p6 = por %p81_p3, %p51_p0 }
   0xb   : > { %p87_p7 = scmp.eq.s32.totalorder %s322_s14, 3  ;;  %p323_p8 = scmp.ge.s32.totalorder %s474_s12, 1 }
   0xc   : > { %s622_s20 = scalar_select %p536_p6, 1, 0 }
   0xd   : > { %p94_p9 = scmp.lt.s32.totalorder %s474_s12, 5  ;;  %p542_p10 = por %p87_p7, %p86_p4 }
   0xe   : > { %p359_p11 = scmp.eq.s32.totalorder %s514_s13, 0  ;;  %s107_s25 = sshll.u32 %s617_s0, 4  ;;  %s108_s25 = int_to_ptr.vmem [resolvable:$true] %s107_s25 }
   0xf   : > { %s623_s21 = scalar_select %p542_p10, 1, 0 }
  0x10   : > { %p547_p12 = pnand %p323_p8, %p94_p9  ;;  %s395_s26 = scalar_lea.vmem %s108_s25, 16 }
  0x11   : > { %p396_p1 = scmp.ne.s32.totalorder %s108_s25, %s395_s26  ;;  %p403_p7 = scmp.lt.s32.totalorder %s108_s25, %s108_s25 }
  0x12   : > { %p351_p13 = pneg %p547_p12  ;;  %p404_p8 = scmp.lt.s32.totalorder %s395_s26, %s395_s26 }
  0x14   : > { %p352_p0 = pnand %p359_p11, %p351_p13  ;;  %p405_p9 = por %p404_p8, %p403_p7 }
  0x16   : > { %p397_p2 = pneg %p352_p0 }
  0x18   : > { %p398_p3 = pnand %p397_p2, %p396_p1 }
  0x1a   : > { %p399_p4 = pneg %p398_p3 }
  0x1c   : > { %p406_p10 = pnand %p405_p9, %p399_p4 }
  0x1e   : > { %409 = shalt.err (!%p406_p10)
}
  0x1f   : > { %s476_s27 = smov [#allocation2]   ;;  %p325_p6 = scmp.ge.s32.totalorder %s474_s12, 4 }
  0x20   : > { %354 = dma.vmem_to_smem (!%p352_p0), %s108_s25, 16, %s476_s27, [#allocation4]  }
  0x21   : > { %114 = sbr.rel (%p325_p6) target bundleno = 44 (0x2c), region = 20 }
  0x26   : > { %117 = sbr.rel (!%p532_p5) target bundleno = 44 (0x2c), region = 24  ;;  %s119_s28 = sand.u32 (%p532_p5), 1, %s470_s11  }
  0x27   : > { %s327_s29 = sshll.u32 (%p532_p5), %s474_s12, 3  ;;  %s326_s30 = sshll.u32 (%p532_p5), %s119_s28, 4 }
  0x28   : > { %s123_s5 = scalar_lea.vmem (%p532_p5), %s618_s1, %s327_s29  ;;  %s121_s6 = scalar_lea.vmem (%p532_p5), [#allocation5], %s326_s30 }
  0x29   : > { %v154_v0 = vld [vmem:[%s123_s5] sm:$0xff] (%p532_p5) }
  0x2a   : > { %v156_v1 = vld [vmem:[%s123_s5 + $0x20] sm:$0xff] (%p532_p5)  ;;  %155 = vst [vmem:[%s121_s6] sm:$0xff] (%p532_p5), %v154_v0 }
  0x2b   : > { %157 = vst [vmem:[%s121_s6 + $0x8] sm:$0xff] %v156_v1 }
  0x2c PF: > { %166 = sbr.rel (%p547_p12) target bundleno = 91 (0x5b), region = 62 }
  0x31   : > { %453 = dma.done.wait (%p359_p11), [#allocation4], 16  }
  0x32   : > { %455 = vsyncadd (%p359_p11), [#allocation4], 4294967280  ;;  %s573_s7 = sand.u32 1, %s466_s10  }
  0x33   : > { %s330_s8 = sshll.u32 %s573_s7, 4 }
  0x34   : > { %s175_s14 = scalar_lea.vmem [#allocation5], %s330_s8 }
  0x35   : > { %179 = sfence }
  0x36   : > { %s195_s16 = sld [smem:[#allocation2]]  ;;  %v204_v2 = vld [vmem:[%s175_s14] sm:$0xff]  ;;  %v340_v3 = vld [vmem:[%s175_s14 + $0x8] sm:$0xff]  ;;  %s331_s28 = sshll.u32 %s573_s7, 3 }
  0x37   : > { %s332_s17 = sld [smem:[#allocation2 + $0x1]]  ;;  %s194_s29 = scalar_lea.vmem [#allocation6], %s331_s28 }
  0x38   : > { %s333_s19 = sld [smem:[#allocation2 + $0x2]]  ;;  %s245_s30 = sshll.u32 %s194_s29, 4  ;;  %s578_s30 = int_to_ptr.vmem [resolvable:$true] %s245_s30 }
  0x39   : > { %s334_s23 = sld [smem:[#allocation2 + $0x3]]  ;;  %s342_s3 = sshll.u32 %s514_s13, 7 }
  0x3a   : > { %s335_s24 = sld [smem:[#allocation2 + $0x4]]  ;;  %s243_s6 = scalar_lea.hbm %s619_s2, %s342_s3 }
  0x3b   : > { %s336_s22 = sld [smem:[#allocation2 + $0x5]]  ;;  %s232_s8 = scalar_lea.sflag [#allocation3], %s573_s7 }
  0x3c   : > { %s337_s25 = sld [smem:[#allocation2 + $0x6]]  ;;  %v207_v4 = vstv %s195_s16  ;;  %s410_s14 = scalar_lea.vmem %s578_s30, 128 }
  0x3d   : > { %s338_s26 = sld [smem:[#allocation2 + $0x7]]  ;;  %v208_v5 = vmul.f32 %v207_v4, %v204_v2  ;;  %v209_v6 = vstv %s332_s17  ;;  %p411_p5 = scmp.ne.s32.totalorder %s578_s30, %s410_s14 }
  0x3e   : > { %v210_v7 = vmul.f32 %v340_v3, %v209_v6  ;;  %v215_v8 = vstv %s333_s19  ;;  %s339_s27 = sld [smem:[#allocation2 + $0x8]]  ;;  %p625_p6 = scmp.ne.s32.totalorder %s622_s20, 0 }
  0x3f   : > { %v216_v9 = vmul.f32 %v215_v8, %v204_v2  ;;  %v217_v10 = vstv %s334_s23  ;;  %s477_s16 = smov [#allocation6]  }
  0x40   : > { %v211_v11 = vadd.f32 %v210_v7, %v208_v5  ;;  %v212_v12 = vstv %s335_s24  ;;  %v218_v13 = vmul.f32 %v340_v3, %v217_v10  ;;  %p412_p10 = pnand %p411_p5, %p625_p6  ;;  %s414_s13 = sshll.u32 %s477_s16, 4  ;;  %s415_s13 = int_to_ptr.vmem [resolvable:$false] %s414_s13 }
  0x41   : > { %v220_v14 = vstv %s336_s22  ;;  %s416_s17 = scalar_lea.vmem %s415_s13, 256  ;;  %p417_p12 = scmp.lt.s32.totalorder %s578_s30, %s415_s13 }
  0x42   : > { %v213_v15 = vadd.f32 %v212_v12, %v211_v11  ;;  %v219_v16 = vadd.f32 %v218_v13, %v216_v9  ;;  %v223_v17 = vstv %s337_s25  ;;  %p413_p11 = pneg %p412_p10  ;;  %p418_p13 = scmp.lt.s32.totalorder %s416_s17, %s410_s14 }
  0x43   : > { %v225_v20 = vstv %s338_s26 }
  0x44   : > { %v214_v18 = vmax.f32 %v213_v15, 0.0  ;;  %v221_v19 = vadd.f32 %v220_v14, %v219_v16  ;;  %v228_v24 = vstv %s339_s27  ;;  %p419_p0 = por %p418_p13, %p417_p12 }
  0x46   : > { %v222_v21 = vmax.f32 %v221_v19, 0.0  ;;  %v224_v22 = vmul.f32 %v223_v17, %v214_v18  ;;  %p420_p1 = pnand %p419_p0, %p413_p11 }
  0x48   : > { %v226_v23 = vmul.f32 %v225_v20, %v222_v21 }
  0x4a   : > { %v227_v25 = vadd.f32 %v226_v23, %v224_v22 }
  0x4c   : > { %v229_v26 = vadd.f32 %v228_v24, %v227_v25 }
  0x4e   : > { %230 = vst [vmem:[%s194_s29] sm:$0xff] %v229_v26 }
  0x4f   : > { %423 = shalt.err (!%p420_p1)
}
  0x50   : > { %s424_s19 = scalar_lea.hbm %s243_s6, 128  ;;  %s428_s24 = scalar_lea.hbm %s619_s2, 512 }
  0x51   : > { %p425_p2 = scmp.ne.s32.totalorder %s243_s6, %s424_s19  ;;  %p429_p7 = scmp.lt.s32.totalorder %s243_s6, %s619_s2 }
  0x52   : > { %p430_p8 = scmp.lt.s32.totalorder %s428_s24, %s424_s19 }
  0x53   : > { %p426_p3 = pnand %p425_p2, %p625_p6 }
  0x54   : > { %p431_p9 = por %p430_p8, %p429_p7 }
  0x55   : > { %p427_p4 = pneg %p426_p3 }
  0x57   : > { %p432_p5 = pnand %p431_p9, %p427_p4 }
  0x59   : > { %435 = shalt.err (!%p432_p5)
}
  0x5a   : > { %349 = dma.vmem_to_hbm [thread:$0]  (%p625_p6), %s578_s30, 128, %s243_s6, %s232_s8  }
  0x5b PF: > { %p361_p10 = scmp.ge.s32.totalorder %s474_s12, 2  ;;  %s257_s26 = sand.u32 1, %s462_s9  }
  0x5c   : > { %p626_p11 = scmp.ne.s32.totalorder %s623_s21, 0  ;;  %s258_s27 = scalar_lea.sflag [#allocation3], %s257_s26 }
  0x5e   : > { %p356_p12 = pnand %p361_p10, %p626_p11 }
  0x60   : > { %p357_p13 = pneg %p356_p12 }
  0x62   : > { %457 = dma.done.wait (%p357_p13), %s258_s27, 128  }
  0x63   : > { %459 = vsyncadd (%p357_p13), %s258_s27, 4294967168  ;;  %p13_p0 = scmp.ge.s32.totalorder %s518_s15, 6   ;;  %s627_s9 = smov %s466_s10 }
  0x64   : > { %s628_s10 = smov %s470_s11  ;;  %s629_s11 = smov %s530_s18 }
  0x65   : > { %s630_s12 = smov %s518_s15  ;;  %15 = sbr.rel (!%p13_p0) target bundleno = 4 (0x4), region = 112 }
  0x6a   :  { %263 = vsyncpa [#allocation3], 1 }
  0x6b   :  { %265 = vsyncpa [#allocation3 + $0x1], 1 }
  0x6c   :  { %266 = vsyncpa [#allocation4], 1 }
  0x6d   :  { %268 = vsyncpa [#allocation4 + $0x1], 1 }

</bundles_post_ra>
